<compile_context>
chip_gen: v7x
topology: tpu7x:2x2x1
jax: 0.10.0
libtpu: 0.0.40
codegen_flags: <defaults>
</compile_context>

<pallas_src>
import functools

import jax
import jax.numpy as jnp
from jax.experimental import pallas as pl
from jax.experimental.pallas import tpu as pltpu


# ----------------------------------------------------------------------------
# Pallas kernel: lane-dense "weight @ activations" matmul (+ optional ReLU)
# ----------------------------------------------------------------------------
def _wx_kernel(x_ref, w_ref, o_ref, *, apply_relu):
    # x_ref: [K, tm] (spatial on lanes), w_ref: [N, K], o_ref: [N, tm]
    acc = jnp.dot(w_ref[...], x_ref[...], preferred_element_type=jnp.float32)
    if apply_relu:
        acc = jnp.maximum(acc, 0.0)
    o_ref[...] = acc.astype(o_ref.dtype)


def _pick_tile(M, K, N, x_bytes, w_bytes, *, batch,
               budget_bytes=16 << 20, tm_cap=4096, min_steps=8):
    """Largest lane tile that fits the VMEM budget, with enough grid steps."""
    if M < 128:
        return int(M)                       # full extent (lane-dim constraint)
    w_foot = 2 * N * K * w_bytes            # resident weight (double-buffered)
    per_m = 2 * K * x_bytes + 2 * N * 4     # x tile + f32 out tile (dbl-buffered)
    tm = (budget_bytes - w_foot) // per_m
    tm = max(128, min(tm, tm_cap, M))
    tm = (tm // 128) * 128
    # v7x has 2 TensorCores: keep enough parallel grid steps to shard across
    # both cores and still double-buffer the per-tile DMAs.
    while tm > 128 and batch * pl.cdiv(M, tm) < min_steps:
        tm -= 128
    return int(tm)


def pallas_nchw_matmul(x, w, *, apply_relu=False, budget_bytes=16 << 20):
    """out[b] = w @ x[b]  (+ optional ReLU).

    x: [B, K, M]  with M = H*W on the last (lane) axis, any float dtype
    w: [N, K]
    -> [B, N, M] float32 == NCHW layout [B, N, H, W] after a free reshape.
    """
    B, Kd, M = x.shape
    N, Kd2 = w.shape
    assert Kd == Kd2, (Kd, Kd2)
    xb = jnp.dtype(x.dtype).itemsize
    wb = jnp.dtype(w.dtype).itemsize
    tm = _pick_tile(M, Kd, N, xb, wb, batch=B, budget_bytes=budget_bytes)
    grid = (B, pl.cdiv(M, tm))

    # Derive the scoped-VMEM limit from the real footprint (+ margin); keeps
    # v5e (16 MiB scoped default) working for large Cin*K*K and stays well
    # under v7x's 64 MiB physical VMEM.
    footprint = 2 * Kd * tm * xb + 2 * N * tm * 4 + 2 * N * Kd * wb
    vmem_limit = int(min(max(footprint + (8 << 20), 16 << 20), 48 << 20))

    kern = functools.partial(_wx_kernel, apply_relu=apply_relu)
    return pl.pallas_call(
        kern,
        out_shape=jax.ShapeDtypeStruct((B, N, M), jnp.float32),
        grid_spec=pltpu.PrefetchScalarGridSpec(
            num_scalar_prefetch=0,
            grid=grid,
            in_specs=[
                pl.BlockSpec((None, Kd, tm), lambda b, i: (b, 0, i)),
                pl.BlockSpec((N, Kd), lambda b, i: (0, 0)),
            ],
            out_specs=pl.BlockSpec((None, N, tm), lambda b, i: (b, 0, i)),
        ),
        compiler_params=pltpu.CompilerParams(
            dimension_semantics=("parallel", "parallel"),
            vmem_limit_bytes=vmem_limit),
    )(x, w)


# ----------------------------------------------------------------------------
# JAX glue: deformable bilinear sampling -> per-batch column tensor
# ----------------------------------------------------------------------------
# TODO(synk): the per-pixel bilinear gather is data-dependent indexing with no
# reliably-lowerable Mosaic equivalent (no per-lane VMEM gather over a full
# [cpg, HW] slab), so it stays in XLA glue instead of being fused into the
# deform matmul kernel; the im2col tensor therefore still round-trips HBM,
# but only once and in bf16.
def _bilinear_sample_cols(x, off_y, off_x, *, K, pad, dg):
    """x: [B, Cin, H, W] (bf16); off_y/off_x: [B, dg, KK, H, W] f32
    -> [B, Cin*KK, H*W] f32.

    Row order along axis 1 is (group, chan-in-group, tap) == (cin, tap), which
    matches w_deform.reshape(Cout, Cin*K*K) column order — so the deform conv
    is a single per-batch matmul with no transpose of the sampled tensor.
    """
    B, C, H, W = x.shape
    KK = K * K
    cpg = C // dg
    HW = H * W
    ft = jnp.float32

    kh = jnp.repeat(jnp.arange(K, dtype=ft), K)  # tap index k = kh*K + kw
    kw = jnp.tile(jnp.arange(K, dtype=ft), K)

    y = (jnp.arange(H, dtype=ft)[None, None, None, :, None] - pad
         + kh[None, None, :, None, None] + off_y.astype(ft))
    xx = (jnp.arange(W, dtype=ft)[None, None, None, None, :] - pad
          + kw[None, None, :, None, None] + off_x.astype(ft))

    y0 = jnp.floor(y)
    x0 = jnp.floor(xx)
    wy1 = y - y0
    wy0 = 1.0 - wy1
    wx1 = xx - x0
    wx0 = 1.0 - wx1

    x_g = x.reshape(B, dg, cpg, HW)              # gather per deformable group

    def corner(yc, xc, w):
        # mmcv zero-padding semantics: an out-of-image corner contributes 0,
        # applied to the per-group scalar weight (no C-wide mask tensors).
        valid = (yc >= 0) & (yc <= H - 1) & (xc >= 0) & (xc <= W - 1)
        w = jnp.where(valid, w, 0.0)                                # [B,dg,KK,H,W]
        yi = jnp.clip(yc, 0, H - 1).astype(jnp.int32)
        xi = jnp.clip(xc, 0, W - 1).astype(jnp.int32)
        idx = (yi * W + xi).reshape(B, dg, 1, KK * HW)              # per-group idx
        v = jnp.take_along_axis(x_g, idx, axis=3, mode="clip")      # [B,dg,cpg,KK*HW]
        v = v.reshape(B, dg, cpg, KK, HW)
        return v * w.reshape(B, dg, 1, KK, HW)                      # bf16*f32 -> f32

    val = (corner(y0, x0, wy0 * wx0)
           + corner(y0, x0 + 1.0, wy0 * wx1)
           + corner(y0 + 1.0, x0, wy1 * wx0)
           + corner(y0 + 1.0, x0 + 1.0, wy1 * wx1))                 # [B,dg,cpg,KK,HW]

    return val.reshape(B, C * KK, HW)


# ----------------------------------------------------------------------------
# Forward: Dcn_apply
# ----------------------------------------------------------------------------
def dcn_apply(x, shape_feat, w_offset, w_deform, *, K=3, dg=4,
              col_dtype=jnp.bfloat16):
    """x: [B, Cin, H, W]; shape_feat: [B, 4, H, W];
    w_offset: [dg*K*K*2, 4, 1, 1] (or [dg*K*K*2, 4]); w_deform: [Cout, Cin, K, K]."""
    B, Cin, H, W = x.shape
    Cout = w_deform.shape[0]
    KK = K * K
    pad = (K - 1) // 2
    HW = H * W

    # ---- 1x1 conv_offset (Pallas), weight rows permuted so dy / dx land as
    # contiguous halves of the output: [B, 2, dg*KK, HW] ----
    wo = w_offset.reshape(dg, KK, 2, 4).transpose(2, 0, 1, 3).reshape(2 * dg * KK, 4)
    sf = shape_feat.reshape(B, 4, HW)
    offset = pallas_nchw_matmul(sf, wo, apply_relu=False)           # [B, 2*dg*KK, HW]
    offset = offset.reshape(B, 2, dg, KK, H, W)                     # free reshape
    off_y = offset[:, 0]                                            # contiguous slab
    off_x = offset[:, 1]                                            # contiguous slab

    # ---- deformable sampling (glue, per-group gather on bf16 x) -> bf16 cols ----
    col = _bilinear_sample_cols(x.astype(col_dtype), off_y, off_x,
                                K=K, pad=pad, dg=dg).astype(col_dtype)

    # ---- deform conv as one per-batch matmul + fused ReLU (Pallas) ----
    wd = w_deform.reshape(Cout, Cin * KK).astype(col_dtype)
    out = pallas_nchw_matmul(col, wd, apply_relu=True)              # [B, Cout, HW]
    return out.reshape(B, Cout, H, W)


if __name__ == "__main__":
    B, Cin, Cout, H, W = 2, 8, 8, 16, 16
    K, dg = 3, 4

    key = jax.random.PRNGKey(0)
    k1, k2, k3, k4 = jax.random.split(key, 4)

    x = jax.random.normal(k1, (B, Cin, H, W), jnp.float32)
    shape_feat = jax.random.normal(k2, (B, 4, H, W), jnp.float32)
    # "normal_init"-style parameters (conv_offset std=0.1, deform conv std=0.01);
    # both convs have no bias.
    w_offset = 0.1 * jax.random.normal(k3, (dg * K * K * 2, 4, 1, 1), jnp.float32)
    w_deform = 0.01 * jax.random.normal(k4, (Cout, Cin, K, K), jnp.float32)

    fwd = jax.jit(functools.partial(dcn_apply, K=K, dg=dg))
    out = fwd(x, shape_feat, w_offset, w_deform)
    jax.block_until_ready(out)
    assert out.shape == (B, Cout, H, W)
    assert bool(jnp.all(jnp.isfinite(out)))
    print("KERNEL_OK")
</pallas_src>

<mosaic_0001>
module attributes {stable_mosaic.version = 11 : i64} {
  func.func @_wx_kernel(%arg0: i32, %arg1: i32, %arg2: memref<1x4x128xf32, #tpu.memory_space<vmem>>, %arg3: memref<72x4xf32, #tpu.memory_space<vmem>>, %arg4: memref<1x72x128xf32, #tpu.memory_space<vmem>>) attributes {dimension_semantics = [#tpu.dimension_semantics<parallel>, #tpu.dimension_semantics<parallel>], iteration_bounds = array<i64: 2, 2>, scalar_prefetch = 0 : i64, scratch_operands = 0 : i64, tpu.core_type = #tpu.core_type<tc>, window_params = [{transform_indices = @transform_0, window_bounds = array<i64: 1, 4, 128>}, {pipeline_mode = #tpu.pipeline_mode<synchronous>, transform_indices = @transform_1, window_bounds = array<i64: 72, 4>}, {transform_indices = @transform_2, window_bounds = array<i64: 1, 72, 128>}]} {
    %c0 = arith.constant 0 : index
    %c0_0 = arith.constant 0 : index
    %0 = vector.load %arg3[%c0, %c0_0] : memref<72x4xf32, #tpu.memory_space<vmem>>, vector<72x4xf32>
    %c0_1 = arith.constant 0 : index
    %c0_2 = arith.constant 0 : index
    %c0_3 = arith.constant 0 : index
    %1 = vector.load %arg2[%c0_1, %c0_2, %c0_3] : memref<1x4x128xf32, #tpu.memory_space<vmem>>, vector<1x4x128xf32>
    %2 = vector.shape_cast %1 : vector<1x4x128xf32> to vector<4x128xf32>
    %cst = arith.constant dense<0.000000e+00> : vector<72x128xf32>
    %3 = tpu.matmul %0, %2, %cst {dimension_numbers = #tpu.dot_dimension_numbers<[1], [0], [0], [1], [0, 0, 1, 1], [], []>} : vector<72x4xf32>, vector<4x128xf32>, vector<72x128xf32> -> vector<72x128xf32>
    %c0_4 = arith.constant 0 : index
    %c0_5 = arith.constant 0 : index
    %c0_6 = arith.constant 0 : index
    %4 = vector.load %arg4[%c0_4, %c0_5, %c0_6] : memref<1x72x128xf32, #tpu.memory_space<vmem>>, vector<1x72x128xf32>
    %5 = vector.shape_cast %4 : vector<1x72x128xf32> to vector<72x128xf32>
    %6 = vector.shape_cast %3 : vector<72x128xf32> to vector<1x72x128xf32>
    tpu.vector_store %arg4[%c0_4, %c0_5, %c0_6], %6 {strides = array<i32>} : memref<1x72x128xf32, #tpu.memory_space<vmem>>, vector<1x72x128xf32>,
    return
  }
  func.func @transform_0(%arg0: i32, %arg1: i32) -> (i32, i32, i32) {
    %c0_i32 = arith.constant 0 : i32
    %c0_i32_0 = arith.constant 0 : i32
    return %arg0, %c0_i32, %arg1 : i32, i32, i32
  }
  func.func @transform_1(%arg0: i32, %arg1: i32) -> (i32, i32) {
    %c0_i32 = arith.constant 0 : i32
    %c0_i32_0 = arith.constant 0 : i32
    %c0_i32_1 = arith.constant 0 : i32
    return %c0_i32, %c0_i32_0 : i32, i32
  }
  func.func @transform_2(%arg0: i32, %arg1: i32) -> (i32, i32, i32) {
    %c0_i32 = arith.constant 0 : i32
    %c0_i32_0 = arith.constant 0 : i32
    return %arg0, %c0_i32, %arg1 : i32, i32, i32
  }
}

module attributes {stable_mosaic.version = 11 : i64} {
  func.func @_wx_kernel(%arg0: i32, %arg1: i32, %arg2: memref<1x72x128xbf16, #tpu.memory_space<vmem>>, %arg3: memref<8x72xbf16, #tpu.memory_space<vmem>>, %arg4: memref<1x8x128xf32, #tpu.memory_space<vmem>>) attributes {dimension_semantics = [#tpu.dimension_semantics<parallel>, #tpu.dimension_semantics<parallel>], iteration_bounds = array<i64: 2, 2>, scalar_prefetch = 0 : i64, scratch_operands = 0 : i64, tpu.core_type = #tpu.core_type<tc>, window_params = [{transform_indices = @transform_0, window_bounds = array<i64: 1, 72, 128>}, {pipeline_mode = #tpu.pipeline_mode<synchronous>, transform_indices = @transform_1, window_bounds = array<i64: 8, 72>}, {transform_indices = @transform_2, window_bounds = array<i64: 1, 8, 128>}]} {
    %c0 = arith.constant 0 : index
    %c0_0 = arith.constant 0 : index
    %0 = vector.load %arg3[%c0, %c0_0] : memref<8x72xbf16, #tpu.memory_space<vmem>>, vector<8x72xbf16>
    %c0_1 = arith.constant 0 : index
    %c0_2 = arith.constant 0 : index
    %c0_3 = arith.constant 0 : index
    %1 = vector.load %arg2[%c0_1, %c0_2, %c0_3] : memref<1x72x128xbf16, #tpu.memory_space<vmem>>, vector<1x72x128xbf16>
    %2 = vector.shape_cast %1 : vector<1x72x128xbf16> to vector<72x128xbf16>
    %cst = arith.constant dense<0.000000e+00> : vector<8x128xf32>
    %3 = tpu.matmul %0, %2, %cst {dimension_numbers = #tpu.dot_dimension_numbers<[1], [0], [0], [1], [0, 0, 1, 1], [], []>} : vector<8x72xbf16>, vector<72x128xbf16>, vector<8x128xf32> -> vector<8x128xf32>
    %cst_4 = arith.constant 0.000000e+00 : f32
    %4 = vector.broadcast %cst_4 : f32 to vector<8x128xf32>
    %5 = arith.maximumf %3, %4 : vector<8x128xf32>
    %c0_5 = arith.constant 0 : index
    %c0_6 = arith.constant 0 : index
    %c0_7 = arith.constant 0 : index
    %6 = vector.load %arg4[%c0_5, %c0_6, %c0_7] : memref<1x8x128xf32, #tpu.memory_space<vmem>>, vector<1x8x128xf32>
    %7 = vector.shape_cast %6 : vector<1x8x128xf32> to vector<8x128xf32>
    %8 = vector.shape_cast %5 : vector<8x128xf32> to vector<1x8x128xf32>
    tpu.vector_store %arg4[%c0_5, %c0_6, %c0_7], %8 {strides = array<i32>} : memref<1x8x128xf32, #tpu.memory_space<vmem>>, vector<1x8x128xf32>,
    return
  }
  func.func @transform_0(%arg0: i32, %arg1: i32) -> (i32, i32, i32) {
    %c0_i32 = arith.constant 0 : i32
    %c0_i32_0 = arith.constant 0 : i32
    return %arg0, %c0_i32, %arg1 : i32, i32, i32
  }
  func.func @transform_1(%arg0: i32, %arg1: i32) -> (i32, i32) {
    %c0_i32 = arith.constant 0 : i32
    %c0_i32_0 = arith.constant 0 : i32
    %c0_i32_1 = arith.constant 0 : i32
    return %c0_i32, %c0_i32_0 : i32, i32
  }
  func.func @transform_2(%arg0: i32, %arg1: i32) -> (i32, i32, i32) {
    %c0_i32 = arith.constant 0 : i32
    %c0_i32_0 = arith.constant 0 : i32
    return %arg0, %c0_i32, %arg1 : i32, i32, i32
  }
}

</mosaic_0001>

<bundles_post_ra>
// kernel: dcn_apply.2
= control target key start
LH: loop header
LB: loop body
LE: loop exit
PB: predicated region body
PF: predicated region fallthrough
CT: control target
= control target key end

     0   :  { %s663_s9 = smov 0   ;;  %s665_s10 = smov 0   ;;  %s823_s0 = inlined_call_operand.vmem [shape: f32[2,4,256], index: 0, kind: input, shape index: {}]   ;;  %s824_s1 = inlined_call_operand.vmem [shape: f32[72,4], index: 1, kind: input, shape index: {}]   ;;  %s825_s2 = inlined_call_operand.vmem [shape: f32[2,72,256], index: 2, kind: output, shape index: {}]  }
   0x1   :  { %s667_s11 = smov 0   ;;  %s669_s12 = smov 0  }
   0x2   :  { %s671_s13 = smov 0   ;;  %s673_s14 = smov 0  }
   0x3   :  { %s675_s15 = smov 0  }
   0x4 LB: > { %s21_s16 = sadd.s32 1, %s636_s13  ;;  %s24_s17 = sadd.s32 1, %s640_s14  ;;  %s644_s15 = sphi %s675_s15, %s12_s15   ;;  %s640_s14 = sphi %s673_s14, %s832_s14   ;;  %s636_s13 = sphi %s671_s13, %s831_s13   ;;  %s632_s12 = sphi %s669_s12, %s830_s12   ;;  %s628_s11 = sphi %s667_s11, %s829_s11   ;;  %s624_s10 = sphi %s665_s10, %s828_s10   ;;  %s620_s9 = sphi %s663_s9, %s827_s9  }
   0x5   : > { %p22_p0 = scmp.ge.s32.totalorder %s21_s16, 2  ;;  %s469_s18 = sadd.s32 4294967295, %s644_s15  }
   0x6   : > { %p92_p1 = scmp.ne.s32.totalorder %s624_s10, %s620_s9  ;;  %p93_p2 = scmp.eq.s32.totalorder %s469_s18, 3 }
   0x7   : > { %s834_s16 = smov (%p22_p0, %s21_s16), 0  ;;  %s836_s17 = smov (!%p22_p0, %s24_s17), %s640_s14 }
   0x8   : > { %s78_s19 = ssub.s32 %s636_s13, %s834_s16  ;;  %p26_p3 = scmp.ge.s32.totalorder %s836_s17, 2 }
   0x9   : > { %p473_p4 = scmp.ge.s32.totalorder %s644_s15, 1  ;;  %p709_p5 = por %p93_p2, %p92_p1 }
   0xa   : > { %p131_p6 = scmp.lt.s32.totalorder %s644_s15, 5  ;;  %s838_s17 = smov (%p26_p3, %s836_s17), 0 }
   0xb   : > { %s77_s21 = ssub.s32 %s640_s14, %s838_s17  ;;  %s82_s23 = sadd.s32 1, %s624_s10 }
   0xc   : > { %p132_p7 = pnand %p473_p4, %p131_p6  ;;  %s79_s22 = sor.u32 %s78_s19, %s77_s21 }
   0xd   : > { %p80_p8 = scmp.eq.s32.totalorder %s79_s22, 0  ;;  %p155_p9 = scmp.lt.s32.totalorder (!%p132_p7), %s632_s12, 1  ;;  %v646_v0 = vmov (!%p132_p7), 0.0   ;;  %vm647_vm0 = vmmov (!%p132_p7), 0   ;;  %vm201_vm1 = vcmask (!%p132_p7), 1043456   ;;  %v163_v1 = vld [vmem:[%s824_s1] sm:$0xff] (!%p132_p7) }
   0xe   : > { %135 = sbr.rel (%p132_p7) target bundleno = 266 (0x10a), region = 28  ;;  %p157_p10 = scmp.lt.s32.totalorder (!%p132_p7), %s628_s11, 1  ;;  %499 = vmatprep.subr.mxu0 (!%p132_p7), %v646_v0  ;;  %501 = vmatprep.mubr.msk.f32.mxu0 (!%p132_p7), %vm647_vm0, %v646_v0  ;;  %vm173_vm2 = vcmask (!%p132_p7), 31744   ;;  %v168_v2 = vld [vmem:[%s824_s1 + $0x28] sm:$0xff] (!%p132_p7)  ;;  %v169_v5 = vld [vmem:[%s824_s1 + $0x30] sm:$0xff] (!%p132_p7)  ;;  %v170_v7 = vld [vmem:[%s824_s1 + $0x38] sm:$0xff] (!%p132_p7) }
   0xf   : > { %s720_s24 = scalar_select %p80_p8, %s624_s10, %s82_s23  }
  0x10   : > { %528 = vmatprep.subr.mxu1 (!%p132_p7), %v646_v0  ;;  %516 = vmatprep.mubr.msk.f32.mxu1 (!%p132_p7), %vm647_vm0, %v646_v0  ;;  %v164_v4 = vld [vmem:[%s824_s1 + $0x8] sm:$0xff] (!%p132_p7)  ;;  %v165_v6 = vld [vmem:[%s824_s1 + $0x10] sm:$0xff] (!%p132_p7)  ;;  %v166_v8 = vld [vmem:[%s824_s1 + $0x18] sm:$0xff] (!%p132_p7)  ;;  %s152_s6 = sand.u32 (!%p132_p7), 1, %s620_s9  }
  0x11   : > { %v171_v9 = vld [vmem:[%s824_s1 + $0x40] sm:$0xff] (!%p132_p7)  ;;  %s530_s7 = smul.u32 (!%p132_p7), 72, %s152_s6 }
  0x12   : > { %v167_v10 = vld [vmem:[%s824_s1 + $0x20] sm:$0xff] (!%p132_p7) }
  0x13   : > { %s775_s8 = scalar_lea.vmem (!%p132_p7), [#allocation2], %s530_s7 }
  0x15   : > { %s156_s25 = scalar_select %p155_p9, %s632_s12, 1 }
  0x16   : > { %s158_s26 = scalar_select %p157_p10, %s628_s11, 1 }
  0x17   : > { %s474_s27 = sshll.u32 %s156_s25, 1  ;;  %s531_s9 = smul.u32 (%p709_p5), 18, %s632_s12 }
  0x18   : > { %s160_s28 = sadd.s32 %s474_s27, %s158_s26 }
  0x19   : > { %s475_s29 = sshll.u32 %s160_s28, 2  ;;  %s332_s20 = sadd.s32 (%p709_p5), %s628_s11, %s531_s9 }
  0x1a   : > { %s162_s4 = scalar_lea.vmem %s823_s0, %s475_s29  ;;  %s486_s18 = sshll.u32 (%p709_p5), %s332_s20, 3 }
  0x1b   : > { %v172_v3 = vld [vmem:[%s162_s4] sm:$0xf]  ;;  %s334_s22 = scalar_lea.vmem (%p709_p5), %s825_s2, %s486_s18 }
  0x1c   : > { %500 = vmatpush3.msk.msra.mxu0 %vm201_vm1, %v172_v3  ;;  %529 = vmatpush3.msk.msra.mxu1 %vm201_vm1, %v172_v3 }
  0x1d   : > { %502 = vmatmul.mubr.msk.f32.vlgmr.msra.gmra.mrb[0].mxu0 %vm173_vm2, %v163_v1  ;;  %517 = vmatmul.mubr.msk.f32.vlgmr.msra.gmra.mrb[0].mxu1 %vm173_vm2, %v168_v2 }
  0x1e   : > { %504 = vmatprep.mubr.msk.f32.mxu0 %vm647_vm0, %v646_v0  ;;  %519 = vmatprep.mubr.msk.f32.mxu1 %vm647_vm0, %v646_v0 }
  0x21   : > { %505 = vmatmul.mubr.msk.f32.gmra.mrb[2].mxu0 %vm173_vm2, %v164_v4  ;;  %520 = vmatmul.mubr.msk.f32.gmra.mrb[2].mxu1 %vm173_vm2, %v169_v5 }
  0x22   : > { %507 = vmatprep.mubr.msk.f32.mxu0 %vm647_vm0, %v646_v0  ;;  %522 = vmatprep.mubr.msk.f32.mxu1 %vm647_vm0, %v646_v0 }
  0x25   : > { %508 = vmatmul.mubr.msk.f32.gmra.mrb[4].mxu0 %vm173_vm2, %v165_v6  ;;  %523 = vmatmul.mubr.msk.f32.gmra.mrb[4].mxu1 %vm173_vm2, %v170_v7 }
  0x26   : > { %510 = vmatprep.mubr.msk.f32.mxu0 %vm647_vm0, %v646_v0  ;;  %525 = vmatprep.mubr.msk.f32.mxu1 %vm647_vm0, %v646_v0 }
  0x29   : > { %511 = vmatmul.mubr.msk.f32.gmra.mrb[6].mxu0 %vm173_vm2, %v166_v8  ;;  %526 = vmatmul.mubr.msk.f32.gmra.mrb[6].mxu1 %vm173_vm2, %v171_v9 }
  0x2a   : > { %513 = vmatprep.mubr.msk.f32.mxu0 %vm647_vm0, %v646_v0 }
  0x2d   : > { %514 = vmatmul.mubr.msk.f32.gmra.mrb[8].mxu0 %vm173_vm2, %v167_v10 }
  0xf0   : > { %v271_v11 = vpop.f32.mrb[0].mxu0  ;;  %v296_v12 = vpop.f32.mrb[0].mxu1 }
  0xf1   : > { %315 = vst [vmem:[%s775_s8] sm:$0xff] %v271_v11  ;;  %v503_v13 = vpop.f32.mrb[1].mxu0  ;;  %320 = vst [vmem:[%s775_s8 + $0x28] sm:$0xff] %v296_v12  ;;  %v518_v14 = vpop.f32.mrb[1].mxu1 }
  0xf4   : > { %v276_v15 = vpop.f32.mrb[2].mxu0  ;;  %v301_v16 = vpop.f32.mrb[2].mxu1 }
  0xf5   : > { %316 = vst [vmem:[%s775_s8 + $0x8] sm:$0xff] %v276_v15  ;;  %v506_v17 = vpop.f32.mrb[3].mxu0  ;;  %321 = vst [vmem:[%s775_s8 + $0x30] sm:$0xff] %v301_v16  ;;  %v521_v18 = vpop.f32.mrb[3].mxu1 }
  0xf8   : > { %v281_v19 = vpop.f32.mrb[4].mxu0  ;;  %v306_v20 = vpop.f32.mrb[4].mxu1  ;;  %v378_v29 = vld [vmem:[%s775_s8] sm:$0xff] (%p709_p5)  ;;  %v388_v34 = vld [vmem:[%s775_s8 + $0x28] sm:$0xff] (%p709_p5) }
  0xf9   : > { %317 = vst [vmem:[%s775_s8 + $0x10] sm:$0xff] %v281_v19  ;;  %v509_v21 = vpop.f32.mrb[5].mxu0  ;;  %322 = vst [vmem:[%s775_s8 + $0x38] sm:$0xff] %v306_v20  ;;  %v524_v22 = vpop.f32.mrb[5].mxu1 }
  0xfa   : > { %379 = vst [vmem:[%s334_s22] sm:$0xff] (%p709_p5), %v378_v29  ;;  %389 = vst [vmem:[%s334_s22 + $0x50] sm:$0xff] (%p709_p5), %v388_v34 }
  0xfb   : > { %330 = sbr.rel (!%p709_p5) target bundleno = 266 (0x10a), region = 32 }
  0xfc   : > { %v286_v23 = vpop.f32.mrb[6].mxu0  ;;  %v311_v24 = vpop.f32.mrb[6].mxu1  ;;  %v380_v30 = vld [vmem:[%s775_s8 + $0x8] sm:$0xff] (%p709_p5)  ;;  %v390_v35 = vld [vmem:[%s775_s8 + $0x30] sm:$0xff] (%p709_p5) }
  0xfd   : > { %318 = vst [vmem:[%s775_s8 + $0x18] sm:$0xff] %v286_v23  ;;  %v512_v25 = vpop.f32.mrb[7].mxu0  ;;  %323 = vst [vmem:[%s775_s8 + $0x40] sm:$0xff] %v311_v24  ;;  %v527_v26 = vpop.f32.mrb[7].mxu1 }
  0xfe   : > { %381 = vst [vmem:[%s334_s22 + $0x10] sm:$0xff] (%p709_p5), %v380_v30  ;;  %391 = vst [vmem:[%s334_s22 + $0x60] sm:$0xff] (%p709_p5), %v390_v35 }
 0x100   : > { %v291_v27 = vpop.f32.mrb[8].mxu0  ;;  %v382_v31 = vld [vmem:[%s775_s8 + $0x10] sm:$0xff] (%p709_p5)  ;;  %v392_v36 = vld [vmem:[%s775_s8 + $0x38] sm:$0xff] (%p709_p5) }
 0x101   : > { %319 = vst [vmem:[%s775_s8 + $0x20] sm:$0xff] %v291_v27  ;;  %v515_v28 = vpop.f32.mrb[9].mxu0  ;;  %383 = vst [vmem:[%s334_s22 + $0x20] sm:$0xff] (%p709_p5), %v382_v31 }
 0x102   : > { %393 = vst [vmem:[%s334_s22 + $0x70] sm:$0xff] %v392_v36 }
 0x104   : > { %v384_v32 = vld [vmem:[%s775_s8 + $0x18] sm:$0xff]  ;;  %v394_v37 = vld [vmem:[%s775_s8 + $0x40] sm:$0xff] }
 0x105   : > { %385 = vst [vmem:[%s334_s22 + $0x30] sm:$0xff] %v384_v32  ;;  %395 = vst [vmem:[%s334_s22 + $0x80] sm:$0xff] %v394_v37 }
 0x108   : > { %v386_v33 = vld [vmem:[%s775_s8 + $0x20] sm:$0xff] }
 0x109   : > { %387 = vst [vmem:[%s334_s22 + $0x40] sm:$0xff] %v386_v33 }
 0x10a PF: > { %s12_s15 = sadd.s32 1, %s644_s15   ;;  %s827_s9 = smov %s624_s10 }
 0x10b   : > { %p9_p11 = scmp.ge.s32.totalorder %s12_s15, 6   ;;  %s828_s10 = smov %s720_s24 }
 0x10c   : > { %s829_s11 = smov %s636_s13  ;;  %s830_s12 = smov %s640_s14 }
 0x10d   : > { %s831_s13 = smov %s834_s16  ;;  %s832_s14 = smov %s838_s17 }
 0x10e   :  { %11 = sbr.rel (!%p9_p11) target bundleno = 4 (0x4), region = 96 }

// kernel: dcn_apply.3
= control target key start
LH: loop header
LB: loop body
LE: loop exit
PB: predicated region body
PF: predicated region fallthrough
CT: control target
= control target key end

     0   :  { %s592_s9 = smov 0   ;;  %s594_s10 = smov 0   ;;  %s686_s0 = inlined_call_operand.vmem [shape: bf16[2,72,256], index: 0, kind: input, shape index: {}]   ;;  %s687_s1 = inlined_call_operand.vmem [shape: bf16[8,72], index: 1, kind: input, shape index: {}]   ;;  %s688_s2 = inlined_call_operand.vmem [shape: f32[2,8,256], index: 2, kind: output, shape index: {}]  }
   0x1   :  { %s596_s11 = smov 0   ;;  %s598_s12 = smov 0  }
   0x2   :  { %s600_s13 = smov 0   ;;  %s602_s14 = smov 0  }
   0x3   :  { %s604_s15 = smov 0  }
   0x4 LB: > { %s21_s16 = sadd.s32 1, %s565_s13  ;;  %s24_s17 = sadd.s32 1, %s569_s14  ;;  %s573_s15 = sphi %s604_s15, %s12_s15   ;;  %s569_s14 = sphi %s602_s14, %s694_s14   ;;  %s565_s13 = sphi %s600_s13, %s693_s13   ;;  %s561_s12 = sphi %s598_s12, %s692_s12   ;;  %s557_s11 = sphi %s596_s11, %s691_s11   ;;  %s553_s10 = sphi %s594_s10, %s690_s10   ;;  %s549_s9 = sphi %s592_s9, %s689_s9  }
   0x5   : > { %p22_p0 = scmp.ge.s32.totalorder %s21_s16, 2  ;;  %p40_p1 = scmp.ne.s32.totalorder %s553_s10, %s549_s9 }
   0x6   : > { %p41_p2 = scmp.eq.s32.totalorder %s573_s15, 0  ;;  %s33_s21 = sadd.s32 1, %s553_s10 }
   0x7   : > { %s696_s16 = smov (%p22_p0, %s21_s16), 0  ;;  %s698_s17 = smov (!%p22_p0, %s24_s17), %s569_s14 }
   0x8   : > { %p42_p3 = por %p41_p2, %p40_p1  ;;  %p26_p4 = scmp.ge.s32.totalorder %s698_s17, 2 }
   0x9   : > { %s29_s18 = ssub.s32 %s565_s13, %s696_s16  ;;  %p420_p6 = scmp.ge.s32.totalorder %s573_s15, 4 }
   0xa   : > { %s700_s17 = smov (%p26_p4, %s698_s17), 0 }
   0xb   : > { %s28_s19 = ssub.s32 %s569_s14, %s700_s17  ;;  %118 = sbr.rel (%p420_p6) target bundleno = 31 (0x1f), region = 20 }
   0xc   : > { %s30_s20 = sor.u32 %s29_s18, %s28_s19 }
   0xd   : > { %p31_p5 = scmp.eq.s32.totalorder %s30_s20, 0 }
   0xf   : > { %s643_s22 = scalar_select %p31_p5, %s553_s10, %s33_s21  }
  0x12   : > { %121 = sbr.rel (!%p42_p3) target bundleno = 31 (0x1f), region = 24  ;;  %s123_s23 = sand.u32 (%p42_p3), 1, %s553_s10  }
  0x13   : > { %s454_s24 = smul.u32 (%p42_p3), 18, %s569_s14 }
  0x14   : > { %s453_s25 = smul.u32 (%p42_p3), 36, %s123_s23 }
  0x15   : > { %s127_s26 = sadd.s32 (%p42_p3), %s565_s13, %s454_s24 }
  0x16   : > { %s421_s27 = sshll.u32 (%p42_p3), %s127_s26, 2  ;;  %s125_s3 = scalar_lea.vmem (%p42_p3), [#allocation2], %s453_s25 }
  0x17   : > { %s129_s30 = scalar_lea.vmem (%p42_p3), %s686_s0, %s421_s27 }
  0x18   : > { %v145_v0 = vld [vmem:[%s129_s30] sm:$0xf] (%p42_p3)  ;;  %v147_v1 = vld [vmem:[%s129_s30 + $0x8] sm:$0xf] (%p42_p3)  ;;  %v149_v2 = vld [vmem:[%s129_s30 + $0x10] sm:$0xf] (%p42_p3) }
  0x19   : > { %146 = vst [vmem:[%s125_s3] sm:$0xf] %v145_v0  ;;  %148 = vst [vmem:[%s125_s3 + $0x4] sm:$0xf] %v147_v1  ;;  %v151_v3 = vld [vmem:[%s129_s30 + $0x18] sm:$0xf] }
  0x1a   : > { %150 = vst [vmem:[%s125_s3 + $0x8] sm:$0xf] %v149_v2  ;;  %v153_v4 = vld [vmem:[%s129_s30 + $0x20] sm:$0xf]  ;;  %v155_v5 = vld [vmem:[%s129_s30 + $0x28] sm:$0xf] }
  0x1b   : > { %152 = vst [vmem:[%s125_s3 + $0xc] sm:$0xf] %v151_v3  ;;  %154 = vst [vmem:[%s125_s3 + $0x10] sm:$0xf] %v153_v4  ;;  %v157_v6 = vld [vmem:[%s129_s30 + $0x30] sm:$0xf] }
  0x1c   : > { %156 = vst [vmem:[%s125_s3 + $0x14] sm:$0xf] %v155_v5  ;;  %v159_v7 = vld [vmem:[%s129_s30 + $0x38] sm:$0xf]  ;;  %v161_v8 = vld [vmem:[%s129_s30 + $0x40] sm:$0xf] }
  0x1d   : > { %158 = vst [vmem:[%s125_s3 + $0x18] sm:$0xf] %v157_v6  ;;  %160 = vst [vmem:[%s125_s3 + $0x1c] sm:$0xf] %v159_v7 }
  0x1e   : > { %162 = vst [vmem:[%s125_s3 + $0x20] sm:$0xf] %v161_v8 }
  0x1f PF: > { %p422_p7 = scmp.ge.s32.totalorder %s573_s15, 1  ;;  %p202_p8 = scmp.lt.s32.totalorder %s573_s15, 5 }
  0x21   : > { %p203_p9 = pnand %p422_p7, %p202_p8 }
  0x22   : > { %s209_s4 = sand.u32 (!%p203_p9), 1, %s549_s9   ;;  %v575_v9 = vmov (!%p203_p9), 0.0   ;;  %vm576_vm0 = vmmov (!%p203_p9), 0   ;;  %vm283_vm1 = vcmask (!%p203_p9), 1043456   ;;  %v242_v16 = vld [vmem:[%s687_s1] sm:$0xf] (!%p203_p9) }
  0x23   : > { %206 = sbr.rel (%p203_p9) target bundleno = 274 (0x112), region = 65  ;;  %439 = vmatprep.subr.bf16.mxu0 (!%p203_p9), %v575_v9  ;;  %449 = vmatprep.mubr.msk.bf16.mxu0 (!%p203_p9), %vm576_vm0, %v575_v9  ;;  %vm279_vm2 = vcmask (!%p203_p9), 588800   ;;  %p233_p10 = scmp.lt.s32.totalorder (!%p203_p9), %s561_s12, 1 }
  0x24   : > { %s455_s5 = smul.u32 (!%p203_p9), 36, %s209_s4  ;;  %p235_p11 = scmp.lt.s32.totalorder (!%p203_p9), %s557_s11, 1 }
  0x26   : > { %s211_s6 = scalar_lea.vmem (!%p203_p9), [#allocation2], %s455_s5 }
  0x27   : > { %v514_v10 = vld [vmem:[%s211_s6] sm:$0xff] (!%p203_p9)   ;;  %v515_v11 = vld [vmem:[%s211_s6 + $0x8] sm:$0xff] (!%p203_p9)   ;;  %v516_v12 = vld [vmem:[%s211_s6 + $0x10] sm:$0xff] (!%p203_p9)  }
  0x28   : > { %440 = vmatpush3.bf16.msra.mxu0 (!%p203_p9), %v514_v10  ;;  %v517_v13 = vld [vmem:[%s211_s6 + $0x18] sm:$0xff] (!%p203_p9)   ;;  %v518_v14 = vld [vmem:[%s211_s6 + $0x20] ss:$0 sps:$4 sm:$0xff] (!%p203_p9)  }
  0x29   : > { %441 = vmatprep.subr.bf16.mxu0 (!%p203_p9), %v575_v9  ;;  %v285_v15 = vsel (!%p203_p9), %vm283_vm1, %v518_v14, 0 }
  0x2a   : > { %s702_s12 = smov (!%p233_p10, %s561_s12), 1  ;;  %s704_s11 = smov (!%p235_p11, %s557_s11), 1 }
  0x2b   : > { %s423_s9 = sshll.u32 %s702_s12, 1 }
  0x2c   : > { %442 = vmatpush3.bf16.msra.mxu0 %v515_v11  ;;  %s238_s18 = sadd.s32 %s423_s9, %s704_s11 }
  0x2d   : > { %443 = vmatprep.subr.bf16.mxu0 %v575_v9  ;;  %s424_s19 = sshll.u32 %s238_s18, 3 }
  0x2e   : > { %s240_s23 = scalar_lea.vmem %s688_s2, %s424_s19 }
  0x30   : > { %444 = vmatpush3.bf16.msra.mxu0 %v516_v12 }
  0x31   : > { %445 = vmatprep.subr.bf16.mxu0 %v575_v9 }
  0x34   : > { %446 = vmatpush3.bf16.msra.mxu0 %v517_v13 }
  0x35   : > { %447 = vmatprep.subr.bf16.mxu0 %v575_v9 }
  0x38   : > { %448 = vmatpush3.bf16.msra.mxu0 %v285_v15 }
  0x3b   : > { %450 = vmatmul.mubr.msk.bf16.vlgmr.msra.gmra.mrb[0].mxu0 %vm279_vm2, %v242_v16 }
 0x10e   : > { %v321_v17 = vpop.f32.mrb[0].mxu0 }
 0x10f   : > { %v327_v18 = vmax.f32 %v321_v17, 0.0  ;;  %v451_v19 = vpop.f32.mrb[1].mxu0 }
 0x110   : > { %v324_v20 = vpop.f32.mrb[2].mxu0 }
 0x111   : > { %328 = vst [vmem:[%s240_s23] sm:$0xff] %v327_v18  ;;  %v452_v21 = vpop.f32.mrb[3].mxu0 }
 0x112 PF: > { %s12_s15 = sadd.s32 1, %s573_s15   ;;  %s689_s9 = smov %s553_s10 }
 0x113   : > { %p9_p12 = scmp.ge.s32.totalorder %s12_s15, 6   ;;  %s690_s10 = smov %s643_s22 }
 0x114   : > { %s691_s11 = smov %s565_s13  ;;  %s692_s12 = smov %s569_s14 }
 0x115   : > { %s693_s13 = smov %s696_s16  ;;  %s694_s14 = smov %s700_s17 }
 0x116   :  { %11 = sbr.rel (!%p9_p12) target bundleno = 4 (0x4), region = 104 }

</bundles_post_ra>
